<compile_context>
chip_gen: v7x
topology: tpu7x:2x2x1
jax: 0.10.0
libtpu: 0.0.40
codegen_flags: <defaults>
</compile_context>

<pallas_src>
import jax
import jax.numpy as jnp
from jax.experimental import pallas as pl
from jax.experimental.pallas import tpu as pltpu

HIDDEN_STATE_SIZE = 32    # stand-in for int(sys.argv[3])
IN_FEATURES = 96          # PyTorch forward does x.view(-1, 96)
MID = 20
F_PAD = 128               # lane-dense padded feature width
N_LAYERS = 8

# (in, out) sizes of the 8 Linear layers, in forward order.
LAYER_DIMS = [
    (IN_FEATURES, MID),          # fc1
    (MID, MID),                  # fc2
    (MID, MID),                  # fc3
    (MID, HIDDEN_STATE_SIZE),    # fc4
    (HIDDEN_STATE_SIZE, MID),    # fc7
    (MID, MID),                  # fc8
    (MID, MID),                  # fc9
    (MID, IN_FEATURES),          # fc10
]


def _round_up(n, m):
    return ((n + m - 1) // m) * m


def ae_kernel(x_ref, w_ref, b_ref, o_ref):
    """One batch tile through all 8 Linear+ReLU layers, fully resident in VMEM.

    x_ref : (bt, 96)        activations (io dtype)
    w_ref : (8*128, 128)    packed, zero-padded weights (io dtype)
    b_ref : (8, 128)        packed, zero-padded biases  (io dtype)
    o_ref : (bt, 128)       lane-dense output (cols 96..127 stay exactly zero)
    """
    b_all = b_ref[...].astype(jnp.float32)                      # (8, 128)
    h = x_ref[...].astype(jnp.float32)                          # (bt, 96)

    # fc1: the input only has 96 features, so use the first 96 rows (sublane
    # aligned, static slice) of the padded 128x128 weight block.
    w0 = w_ref[0:IN_FEATURES, :].astype(jnp.float32)            # (96, 128)
    h = jnp.dot(h, w0, preferred_element_type=jnp.float32) + b_all[0:1, :]
    h = jnp.maximum(h, 0.0)                                     # (bt, 128)

    # fc2 .. fc10: zero-padded 128x128 blocks keep the padded lanes at exactly
    # zero through every layer (0-weights + 0-bias -> relu(0) = 0).
    for l in range(1, N_LAYERS):
        w = w_ref[l * F_PAD:(l + 1) * F_PAD, :].astype(jnp.float32)  # (128, 128)
        h = jnp.dot(h, w, preferred_element_type=jnp.float32) + b_all[l:l + 1, :]
        h = jnp.maximum(h, 0.0)

    o_ref[...] = h.astype(o_ref.dtype)


def pack_params(params, io_dtype):
    """Pack 8 (W, b) pairs into zero-padded lane-dense blobs."""
    w_rows = []
    b_rows = []
    for (w, b) in params:
        din, dout = w.shape
        wp = jnp.zeros((F_PAD, F_PAD), jnp.float32).at[:din, :dout].set(w)
        bp = jnp.zeros((F_PAD,), jnp.float32).at[:dout].set(b)
        w_rows.append(wp)
        b_rows.append(bp)
    w_blob = jnp.concatenate(w_rows, axis=0).astype(io_dtype)   # (8*128, 128)
    b_blob = jnp.stack(b_rows, axis=0).astype(io_dtype)         # (8, 128)
    return w_blob, b_blob


def ae_forward(x, params, *, batch_tile=512, io_dtype=None):
    """Equivalent of AE.forward: relu-MLP applied to x.view(-1, 96).

    batch_tile : rows per grid step (multiple of 8).  512 keeps per-step
        overhead negligible while leaving >= 8 grid steps for realistic batch
        sizes (so v7x's two TensorCores both get work) and fits any gen's VMEM.
    io_dtype   : HBM storage/transfer dtype for activations + params
        (e.g. jnp.bfloat16 to halve HBM traffic); compute stays f32 in-kernel.
    """
    io_dtype = x.dtype if io_dtype is None else io_dtype
    x2d = x.reshape(-1, IN_FEATURES).astype(io_dtype)
    n_rows = x2d.shape[0]

    # Clamp the tile for tiny inputs; keep it a multiple of 8 (sublane).
    bt = min(batch_tile, _round_up(n_rows, 8))
    bt = max(8, _round_up(bt, 8))

    # Zero-pad rows so the grid covers everything (no divisibility requirement).
    n_pad = _round_up(n_rows, bt)
    if n_pad != n_rows:
        x2d = jnp.pad(x2d, ((0, n_pad - n_rows), (0, 0)))

    w_blob, b_blob = pack_params(params, io_dtype)

    grid = (n_pad // bt,)
    out = pl.pallas_call(
        ae_kernel,
        out_shape=jax.ShapeDtypeStruct((n_pad, F_PAD), io_dtype),
        grid_spec=pltpu.PrefetchScalarGridSpec(
            num_scalar_prefetch=0,
            grid=grid,
            in_specs=[
                # Activations: tiled over rows, natural 96-wide layout.
                pl.BlockSpec((bt, IN_FEATURES), lambda i: (i, 0)),
                # Packed weights / biases: constant block index -> DMA'd once,
                # resident across all grid steps.
                pl.BlockSpec((N_LAYERS * F_PAD, F_PAD), lambda i: (0, 0)),
                pl.BlockSpec((N_LAYERS, F_PAD), lambda i: (0, 0)),
            ],
            # Lane-dense (128-wide) output -> unmasked vector stores.
            out_specs=pl.BlockSpec((bt, F_PAD), lambda i: (i, 0)),
        ),
        compiler_params=pltpu.CompilerParams(
            dimension_semantics=("parallel",)),
    )(x2d, w_blob, b_blob)

    # Drop row padding and the lane padding -> semantic (n_rows, 96) result.
    return out[:n_rows, :IN_FEATURES]


def init_params(key):
    """Deterministic synthetic weights; shapes match the PyTorch nn.Linear layers
    (stored directly in (in, out) layout so y = x @ W + b == nn.Linear)."""
    params = []
    for (din, dout) in LAYER_DIMS:
        kw, kb, key = jax.random.split(key, 3)
        scale = 1.0 / jnp.sqrt(jnp.float32(din))
        w = jax.random.uniform(kw, (din, dout), jnp.float32, -scale, scale)
        b = jax.random.uniform(kb, (dout,), jnp.float32, -scale, scale)
        params.append((w, b))
    return params


def ae_reference(x, params):
    h = x.reshape(-1, IN_FEATURES).astype(jnp.float32)
    for (w, b) in params:
        h = jnp.maximum(h @ w + b, 0.0)
    return h


if __name__ == "__main__":
    key = jax.random.PRNGKey(0)
    kx, kp = jax.random.split(key)

    params = init_params(kp)
    # Input (2, 8, 96): forward flattens to (16, 96), same as x.view(-1, 96).
    x = jax.random.normal(kx, (2, 8, IN_FEATURES), jnp.float32)

    ref = ae_reference(x, params)

    # f32 I/O path: matches the f32 reference tightly.
    out_f32 = jax.block_until_ready(ae_forward(x, params))
    assert out_f32.shape == (16, IN_FEATURES)
    assert jnp.allclose(out_f32, ref, atol=1e-5, rtol=1e-5)

    # bf16 I/O path (recommended for production on this HBM-bound kernel):
    # halves transfer bytes; accumulation stays f32 inside the kernel.
    out_bf16 = jax.block_until_ready(
        ae_forward(x, params, io_dtype=jnp.bfloat16)).astype(jnp.float32)
    assert out_bf16.shape == (16, IN_FEATURES)
    assert jnp.allclose(out_bf16, ref, atol=1e-1, rtol=1e-1)

    print("KERNEL_OK")
</pallas_src>

<mosaic_0001>
module attributes {stable_mosaic.version = 11 : i64} {
  func.func @ae_kernel(%arg0: i32, %arg1: memref<16x96xf32, #tpu.memory_space<vmem>>, %arg2: memref<1024x128xf32, #tpu.memory_space<vmem>>, %arg3: memref<8x128xf32, #tpu.memory_space<vmem>>, %arg4: memref<16x128xf32, #tpu.memory_space<vmem>>) attributes {dimension_semantics = [#tpu.dimension_semantics<parallel>], iteration_bounds = array<i64: 1>, scalar_prefetch = 0 : i64, scratch_operands = 0 : i64, tpu.core_type = #tpu.core_type<tc>, window_params = [{transform_indices = @transform_0, window_bounds = array<i64: 16, 96>}, {pipeline_mode = #tpu.pipeline_mode<synchronous>, transform_indices = @transform_1, window_bounds = array<i64: 1024, 128>}, {pipeline_mode = #tpu.pipeline_mode<synchronous>, transform_indices = @transform_2, window_bounds = array<i64: 8, 128>}, {transform_indices = @transform_3, window_bounds = array<i64: 16, 128>}]} {
    %c0 = arith.constant 0 : index
    %c0_0 = arith.constant 0 : index
    %0 = vector.load %arg3[%c0, %c0_0] : memref<8x128xf32, #tpu.memory_space<vmem>>, vector<8x128xf32>
    %c0_1 = arith.constant 0 : index
    %c0_2 = arith.constant 0 : index
    %1 = vector.load %arg1[%c0_1, %c0_2] : memref<16x96xf32, #tpu.memory_space<vmem>>, vector<16x96xf32>
    %c0_3 = arith.constant 0 : index
    %c0_4 = arith.constant 0 : index
    %2 = vector.load %arg2[%c0_3, %c0_4] : memref<1024x128xf32, #tpu.memory_space<vmem>>, vector<96x128xf32>
    %cst = arith.constant dense<0.000000e+00> : vector<16x128xf32>
    %3 = tpu.matmul %1, %2, %cst {dimension_numbers = #tpu.dot_dimension_numbers<[1], [0], [0], [1], [0, 0, 1, 1], [], []>} : vector<16x96xf32>, vector<96x128xf32>, vector<16x128xf32> -> vector<16x128xf32>
    %4 = vector.extract_strided_slice %0 {offsets = [0, 0], sizes = [1, 128], strides = [1, 1]} : vector<8x128xf32> to vector<1x128xf32>
    %5 = vector.broadcast %4 : vector<1x128xf32> to vector<16x128xf32>
    %6 = arith.addf %3, %5 : vector<16x128xf32>
    %cst_5 = arith.constant 0.000000e+00 : f32
    %7 = vector.broadcast %cst_5 : f32 to vector<16x128xf32>
    %8 = arith.maximumf %6, %7 : vector<16x128xf32>
    %c128 = arith.constant 128 : index
    %c0_6 = arith.constant 0 : index
    %9 = vector.load %arg2[%c128, %c0_6] : memref<1024x128xf32, #tpu.memory_space<vmem>>, vector<128x128xf32>
    %cst_7 = arith.constant dense<0.000000e+00> : vector<16x128xf32>
    %10 = tpu.matmul %8, %9, %cst_7 {dimension_numbers = #tpu.dot_dimension_numbers<[1], [0], [0], [1], [0, 0, 1, 1], [], []>} : vector<16x128xf32>, vector<128x128xf32>, vector<16x128xf32> -> vector<16x128xf32>
    %11 = vector.extract_strided_slice %0 {offsets = [1, 0], sizes = [1, 128], strides = [1, 1]} : vector<8x128xf32> to vector<1x128xf32>
    %12 = vector.broadcast %11 : vector<1x128xf32> to vector<16x128xf32>
    %13 = arith.addf %10, %12 : vector<16x128xf32>
    %cst_8 = arith.constant 0.000000e+00 : f32
    %14 = vector.broadcast %cst_8 : f32 to vector<16x128xf32>
    %15 = arith.maximumf %13, %14 : vector<16x128xf32>
    %c256 = arith.constant 256 : index
    %c0_9 = arith.constant 0 : index
    %16 = vector.load %arg2[%c256, %c0_9] : memref<1024x128xf32, #tpu.memory_space<vmem>>, vector<128x128xf32>
    %cst_10 = arith.constant dense<0.000000e+00> : vector<16x128xf32>
    %17 = tpu.matmul %15, %16, %cst_10 {dimension_numbers = #tpu.dot_dimension_numbers<[1], [0], [0], [1], [0, 0, 1, 1], [], []>} : vector<16x128xf32>, vector<128x128xf32>, vector<16x128xf32> -> vector<16x128xf32>
    %18 = vector.extract_strided_slice %0 {offsets = [2, 0], sizes = [1, 128], strides = [1, 1]} : vector<8x128xf32> to vector<1x128xf32>
    %19 = vector.broadcast %18 : vector<1x128xf32> to vector<16x128xf32>
    %20 = arith.addf %17, %19 : vector<16x128xf32>
    %cst_11 = arith.constant 0.000000e+00 : f32
    %21 = vector.broadcast %cst_11 : f32 to vector<16x128xf32>
    %22 = arith.maximumf %20, %21 : vector<16x128xf32>
    %c384 = arith.constant 384 : index
    %c0_12 = arith.constant 0 : index
    %23 = vector.load %arg2[%c384, %c0_12] : memref<1024x128xf32, #tpu.memory_space<vmem>>, vector<128x128xf32>
    %cst_13 = arith.constant dense<0.000000e+00> : vector<16x128xf32>
    %24 = tpu.matmul %22, %23, %cst_13 {dimension_numbers = #tpu.dot_dimension_numbers<[1], [0], [0], [1], [0, 0, 1, 1], [], []>} : vector<16x128xf32>, vector<128x128xf32>, vector<16x128xf32> -> vector<16x128xf32>
    %25 = vector.extract_strided_slice %0 {offsets = [3, 0], sizes = [1, 128], strides = [1, 1]} : vector<8x128xf32> to vector<1x128xf32>
    %26 = vector.broadcast %25 : vector<1x128xf32> to vector<16x128xf32>
    %27 = arith.addf %24, %26 : vector<16x128xf32>
    %cst_14 = arith.constant 0.000000e+00 : f32
    %28 = vector.broadcast %cst_14 : f32 to vector<16x128xf32>
    %29 = arith.maximumf %27, %28 : vector<16x128xf32>
    %c512 = arith.constant 512 : index
    %c0_15 = arith.constant 0 : index
    %30 = vector.load %arg2[%c512, %c0_15] : memref<1024x128xf32, #tpu.memory_space<vmem>>, vector<128x128xf32>
    %cst_16 = arith.constant dense<0.000000e+00> : vector<16x128xf32>
    %31 = tpu.matmul %29, %30, %cst_16 {dimension_numbers = #tpu.dot_dimension_numbers<[1], [0], [0], [1], [0, 0, 1, 1], [], []>} : vector<16x128xf32>, vector<128x128xf32>, vector<16x128xf32> -> vector<16x128xf32>
    %32 = vector.extract_strided_slice %0 {offsets = [4, 0], sizes = [1, 128], strides = [1, 1]} : vector<8x128xf32> to vector<1x128xf32>
    %33 = vector.broadcast %32 : vector<1x128xf32> to vector<16x128xf32>
    %34 = arith.addf %31, %33 : vector<16x128xf32>
    %cst_17 = arith.constant 0.000000e+00 : f32
    %35 = vector.broadcast %cst_17 : f32 to vector<16x128xf32>
    %36 = arith.maximumf %34, %35 : vector<16x128xf32>
    %c640 = arith.constant 640 : index
    %c0_18 = arith.constant 0 : index
    %37 = vector.load %arg2[%c640, %c0_18] : memref<1024x128xf32, #tpu.memory_space<vmem>>, vector<128x128xf32>
    %cst_19 = arith.constant dense<0.000000e+00> : vector<16x128xf32>
    %38 = tpu.matmul %36, %37, %cst_19 {dimension_numbers = #tpu.dot_dimension_numbers<[1], [0], [0], [1], [0, 0, 1, 1], [], []>} : vector<16x128xf32>, vector<128x128xf32>, vector<16x128xf32> -> vector<16x128xf32>
    %39 = vector.extract_strided_slice %0 {offsets = [5, 0], sizes = [1, 128], strides = [1, 1]} : vector<8x128xf32> to vector<1x128xf32>
    %40 = vector.broadcast %39 : vector<1x128xf32> to vector<16x128xf32>
    %41 = arith.addf %38, %40 : vector<16x128xf32>
    %cst_20 = arith.constant 0.000000e+00 : f32
    %42 = vector.broadcast %cst_20 : f32 to vector<16x128xf32>
    %43 = arith.maximumf %41, %42 : vector<16x128xf32>
    %c768 = arith.constant 768 : index
    %c0_21 = arith.constant 0 : index
    %44 = vector.load %arg2[%c768, %c0_21] : memref<1024x128xf32, #tpu.memory_space<vmem>>, vector<128x128xf32>
    %cst_22 = arith.constant dense<0.000000e+00> : vector<16x128xf32>
    %45 = tpu.matmul %43, %44, %cst_22 {dimension_numbers = #tpu.dot_dimension_numbers<[1], [0], [0], [1], [0, 0, 1, 1], [], []>} : vector<16x128xf32>, vector<128x128xf32>, vector<16x128xf32> -> vector<16x128xf32>
    %46 = vector.extract_strided_slice %0 {offsets = [6, 0], sizes = [1, 128], strides = [1, 1]} : vector<8x128xf32> to vector<1x128xf32>
    %47 = vector.broadcast %46 : vector<1x128xf32> to vector<16x128xf32>
    %48 = arith.addf %45, %47 : vector<16x128xf32>
    %cst_23 = arith.constant 0.000000e+00 : f32
    %49 = vector.broadcast %cst_23 : f32 to vector<16x128xf32>
    %50 = arith.maximumf %48, %49 : vector<16x128xf32>
    %c896 = arith.constant 896 : index
    %c0_24 = arith.constant 0 : index
    %51 = vector.load %arg2[%c896, %c0_24] : memref<1024x128xf32, #tpu.memory_space<vmem>>, vector<128x128xf32>
    %cst_25 = arith.constant dense<0.000000e+00> : vector<16x128xf32>
    %52 = tpu.matmul %50, %51, %cst_25 {dimension_numbers = #tpu.dot_dimension_numbers<[1], [0], [0], [1], [0, 0, 1, 1], [], []>} : vector<16x128xf32>, vector<128x128xf32>, vector<16x128xf32> -> vector<16x128xf32>
    %53 = vector.extract_strided_slice %0 {offsets = [7, 0], sizes = [1, 128], strides = [1, 1]} : vector<8x128xf32> to vector<1x128xf32>
    %54 = vector.broadcast %53 : vector<1x128xf32> to vector<16x128xf32>
    %55 = arith.addf %52, %54 : vector<16x128xf32>
    %cst_26 = arith.constant 0.000000e+00 : f32
    %56 = vector.broadcast %cst_26 : f32 to vector<16x128xf32>
    %57 = arith.maximumf %55, %56 : vector<16x128xf32>
    %c0_27 = arith.constant 0 : index
    %c0_28 = arith.constant 0 : index
    %58 = vector.load %arg4[%c0_27, %c0_28] : memref<16x128xf32, #tpu.memory_space<vmem>>, vector<16x128xf32>
    tpu.vector_store %arg4[%c0_27, %c0_28], %57 {strides = array<i32>} : memref<16x128xf32, #tpu.memory_space<vmem>>, vector<16x128xf32>,
    return
  }
  func.func @transform_0(%arg0: i32) -> (i32, i32) {
    %c0_i32 = arith.constant 0 : i32
    %c0_i32_0 = arith.constant 0 : i32
    return %arg0, %c0_i32 : i32, i32
  }
  func.func @transform_1(%arg0: i32) -> (i32, i32) {
    %c0_i32 = arith.constant 0 : i32
    %c0_i32_0 = arith.constant 0 : i32
    %c0_i32_1 = arith.constant 0 : i32
    return %c0_i32, %c0_i32_0 : i32, i32
  }
  func.func @transform_2(%arg0: i32) -> (i32, i32) {
    %c0_i32 = arith.constant 0 : i32
    %c0_i32_0 = arith.constant 0 : i32
    %c0_i32_1 = arith.constant 0 : i32
    return %c0_i32, %c0_i32_0 : i32, i32
  }
  func.func @transform_3(%arg0: i32) -> (i32, i32) {
    %c0_i32 = arith.constant 0 : i32
    %c0_i32_0 = arith.constant 0 : i32
    return %arg0, %c0_i32 : i32, i32
  }
}

</mosaic_0001>

<bundles_post_ra>
// kernel: tpu_custom_call.1
= control target key start
LH: loop header
LB: loop body
LE: loop exit
PB: predicated region body
PF: predicated region fallthrough
CT: control target
= control target key end

     0   :  { %8 = vsyncpa [#allocation3], 0  ;;  %s1730_s0 = inlined_call_operand.hbm [shape: f32[16,96], index: 0, kind: input, shape index: {}]   ;;  %s1731_s1 = inlined_call_operand.hbm [shape: f32[1024,128], index: 1, kind: input, shape index: {}]   ;;  %s1732_s2 = inlined_call_operand.hbm [shape: f32[8,128], index: 2, kind: input, shape index: {}]   ;;  %s1733_s3 = inlined_call_operand.hbm [shape: f32[16,128], index: 3, kind: output, shape index: {}]  }
   0x1   :  { %9 = vsyncpa [#allocation6], 0 }
   0x2   :  { %10 = vsyncpa [#allocation4], 0  ;;  %s1618_s12 = smov [#allocation5]   ;;  %s1619_s14 = smov [#allocation2]  }
   0x3   :  { %s28_s13 = sshll.u32 %s1618_s12, 4  ;;  %s16_s15 = sshll.u32 %s1619_s14, 4  ;;  %s29_s13 = int_to_ptr.vmem [resolvable:$true] %s28_s13  ;;  %s1644_s15 = int_to_ptr.vmem [resolvable:$true] %s16_s15 }
   0x4   :  { %s1524_s18 = scalar_lea.hbm %s1731_s1, 16384 }
   0x5   :  { %p1525_p0 = scmp.ne.s32.totalorder %s1731_s1, %s1524_s18  ;;  %p1528_p1 = scmp.lt.u32.totalorder %s1524_s18, %s1731_s1 }
   0x7   :  { %p1530_p2 = pnand %p1528_p1, %p1525_p0 }
   0x9   :  { %1533 = shalt.err (!%p1530_p2)
}
   0xa   :  { %s1534_s23 = scalar_lea.vmem %s29_s13, 16384  ;;  %p1539_p4 = scmp.lt.s32.totalorder %s29_s13, %s29_s13 }
   0xb   :  { %p1535_p3 = scmp.ne.s32.totalorder %s29_s13, %s1534_s23  ;;  %p1540_p5 = scmp.lt.s32.totalorder %s1534_s23, %s1534_s23 }
   0xd   :  { %p1541_p6 = por %p1540_p5, %p1539_p4 }
   0xf   :  { %p1542_p7 = pnand %p1541_p6, %p1535_p3 }
  0x11   :  { %1545 = shalt.err (!%p1542_p7)
}
  0x12   :  { %s1620_s24 = smov 128   ;;  %s1621_s25 = smov 8  }
  0x13   :  { %34 = dma.hbm_to_vmem [thread:$0]  %s1731_s1, 16384, %s29_s13, [#allocation6], %s1620_s24, %s1620_s24, %s1621_s25  }
  0x14   :  { %s1546_s30 = scalar_lea.hbm %s1730_s0, 256 }
  0x15   :  { %p1547_p8 = scmp.ne.s32.totalorder %s1730_s0, %s1546_s30  ;;  %p1550_p9 = scmp.lt.u32.totalorder %s1546_s30, %s1730_s0 }
  0x17   :  { %p1552_p10 = pnand %p1550_p9, %p1547_p8 }
  0x19   :  { %1555 = shalt.err (!%p1552_p10)
}
  0x1a   :  { %s1556_s8 = scalar_lea.vmem %s1644_s15, 256  ;;  %p1561_p12 = scmp.lt.s32.totalorder %s1644_s15, %s1644_s15 }
  0x1b   :  { %p1557_p11 = scmp.ne.s32.totalorder %s1644_s15, %s1556_s8  ;;  %p1562_p13 = scmp.lt.s32.totalorder %s1556_s8, %s1556_s8 }
  0x1d   :  { %p1563_p0 = por %p1562_p13, %p1561_p12 }
  0x1f   :  { %p1564_p1 = pnand %p1563_p0, %p1557_p11 }
  0x21   :  { %1567 = shalt.err (!%p1564_p1)
}
  0x22   :  { %22 = dma.hbm_to_vmem [thread:$0]  %s1730_s0, 256, %s1644_s15, [#allocation3], %s1620_s24, %s1620_s24, %s1621_s25  }
  0x23   :  { %s1622_s10 = smov [#allocation7]   ;;  %s1568_s14 = scalar_lea.hbm %s1732_s2, 128 }
  0x24   :  { %s41_s11 = sshll.u32 %s1622_s10, 4  ;;  %p1569_p2 = scmp.ne.s32.totalorder %s1732_s2, %s1568_s14  ;;  %s42_s11 = int_to_ptr.vmem [resolvable:$true] %s41_s11 }
  0x25   :  { %p1572_p3 = scmp.lt.u32.totalorder %s1568_s14, %s1732_s2 }
  0x27   :  { %p1574_p4 = pnand %p1572_p3, %p1569_p2 }
  0x29   :  { %1577 = shalt.err (!%p1574_p4)
}
  0x2a   :  { %s1578_s20 = scalar_lea.vmem %s42_s11, 128  ;;  %p1583_p6 = scmp.lt.s32.totalorder %s42_s11, %s42_s11 }
  0x2b   :  { %p1579_p5 = scmp.ne.s32.totalorder %s42_s11, %s1578_s20  ;;  %p1584_p7 = scmp.lt.s32.totalorder %s1578_s20, %s1578_s20 }
  0x2d   :  { %p1585_p8 = por %p1584_p7, %p1583_p6 }
  0x2f   :  { %p1586_p9 = pnand %p1585_p8, %p1579_p5 }
  0x31   :  { %1589 = shalt.err (!%p1586_p9)
}
  0x32   :  { %44 = dma.hbm_to_vmem [thread:$0]  %s1732_s2, 128, %s42_s11, [#allocation6]  }
  0x33   :  { %1612 = dma.done.wait [#allocation3], 256  }
  0x34   :  { %1613 = vsyncadd [#allocation3], 4294967040 }
  0x35   :  { %1614 = dma.done.wait [#allocation6], 16512  }
  0x36   :  { %1615 = vsyncadd [#allocation6], 4294950784  ;;  %v57_v0 = vld [vmem:[#allocation5] sm:$0xff]  ;;  %v58_v1 = vld [vmem:[#allocation5 + $0x8] sm:$0xff]  ;;  %vm73_vm0 = vcmask 785408   ;;  %s1623_s2 = smov [#allocation8]  }
  0x37   :  { %v59_v2 = vld [vmem:[#allocation5 + $0x10] sm:$0xff]  ;;  %v1270_v3 = vpack.c.bf16 %v58_v1, %v57_v0  ;;  %v60_v4 = vld [vmem:[#allocation5 + $0x18] sm:$0xff]  ;;  %v61_v6 = vld [vmem:[#allocation5 + $0x20] sm:$0xff]  ;;  %v69_v1 = vlaneseq  ;;  %s843_s21 = sshll.u32 %s1623_s2, 4  ;;  %s844_s21 = int_to_ptr.vmem [resolvable:$true] %s843_s21 }
  0x38   :  { %v1274_v5 = vpack.c.bf16 %v60_v4, %v59_v2  ;;  %v62_v7 = vld [vmem:[#allocation5 + $0x28] sm:$0xff]  ;;  %v55_v8 = vld [vmem:[#allocation2] sm:$0xff]  ;;  %v157_v9 = vld [vmem:[#allocation5 + $0x80] sm:$0xff]  ;;  %s1590_s22 = scalar_lea.vmem %s844_s21, 256  ;;  %p1595_p11 = scmp.lt.s32.totalorder %s844_s21, %s844_s21 }
  0x39   :  { %1271 = vmatprep.subr.bf16.mxu0 %v1270_v3  ;;  %v1278_v10 = vpack.c.bf16 %v62_v7, %v61_v6  ;;  %1022 = vmatprep.mubr.msk.f32.mxu0 %vm73_vm0, %v55_v8  ;;  %v158_v11 = vld [vmem:[#allocation5 + $0x88] sm:$0xff]  ;;  %v159_v12 = vld [vmem:[#allocation5 + $0x90] sm:$0xff]  ;;  %v160_v13 = vld [vmem:[#allocation5 + $0x98] sm:$0xff]  ;;  %v1695_v2 = vshrl.u32 %v69_v1, 7  ;;  %p1591_p10 = scmp.ne.s32.totalorder %s844_s21, %s1590_s22  ;;  %p1596_p12 = scmp.lt.s32.totalorder %s1590_s22, %s1590_s22 }
  0x3a   :  { %1273 = vmatpush3.bf16.msra.mxu0 %v1270_v3  ;;  %v63_v14 = vld [vmem:[#allocation5 + $0x30] sm:$0xff]  ;;  %v64_v15 = vld [vmem:[#allocation5 + $0x38] sm:$0xff]  ;;  %v1294_v16 = vpack.c.bf16 %v158_v11, %v157_v9  ;;  %v1298_v17 = vpack.c.bf16 %v160_v13, %v159_v12  ;;  %v161_v18 = vld [vmem:[#allocation5 + $0xa0] sm:$0xff] }
  0x3b   :  { %1275 = vmatprep.subr.bf16.mxu0 %v1274_v5  ;;  %v162_v19 = vld [vmem:[#allocation5 + $0xa8] sm:$0xff]  ;;  %v1282_v20 = vpack.c.bf16 %v64_v15, %v63_v14  ;;  %v65_v21 = vld [vmem:[#allocation5 + $0x40] sm:$0xff]  ;;  %v163_v24 = vld [vmem:[#allocation5 + $0xb0] sm:$0xff]  ;;  %v71_v3 = vsub.s32 0, %v1695_v2  ;;  %p1597_p13 = por %p1596_p12, %p1595_p11 }
  0x3c   :  { %1295 = vmatprep.subr.bf16.mxu1 %v1294_v16  ;;  %v66_v22 = vld [vmem:[#allocation5 + $0x48] sm:$0xff]  ;;  %v1302_v23 = vpack.c.bf16 %v162_v19, %v161_v18  ;;  %v164_v25 = vld [vmem:[#allocation5 + $0xb8] sm:$0xff]  ;;  %v67_v27 = vld [vmem:[#allocation5 + $0x50] sm:$0xff] }
  0x3d   :  { %1297 = vmatpush3.bf16.msra.mxu1 %v1294_v16  ;;  %v1286_v26 = vpack.c.bf16 %v66_v22, %v65_v21  ;;  %v68_v28 = vld [vmem:[#allocation5 + $0x58] sm:$0xff]  ;;  %v1306_v29 = vpack.c.bf16 %v164_v25, %v163_v24  ;;  %v165_v30 = vld [vmem:[#allocation5 + $0xc0] sm:$0xff]  ;;  %v166_v31 = vld [vmem:[#allocation5 + $0xc8] sm:$0xff]  ;;  %p1598_p0 = pnand %p1597_p13, %p1591_p10 }
  0x3e   :  { %1277 = vmatpush3.bf16.msra.mxu0 %v1274_v5  ;;  %1299 = vmatprep.subr.bf16.mxu1 %v1298_v17  ;;  %v1290_v32 = vpack.c.bf16 %v68_v28, %v67_v27  ;;  %v1310_v33 = vpack.c.bf16 %v166_v31, %v165_v30  ;;  %v167_v34 = vld [vmem:[#allocation5 + $0xd0] sm:$0xff]  ;;  %v168_v35 = vld [vmem:[#allocation5 + $0xd8] sm:$0xff]  ;;  %v169_v37 = vld [vmem:[#allocation5 + $0xe0] sm:$0xff] }
  0x3f   :  { %1279 = vmatprep.subr.bf16.mxu0 %v1278_v10  ;;  %v1314_v36 = vpack.c.bf16 %v168_v35, %v167_v34  ;;  %v170_v38 = vld [vmem:[#allocation5 + $0xe8] sm:$0xff]  ;;  %v56_v39 = vld [vmem:[#allocation2 + $0x8] sm:$0xff]  ;;  %v171_v41 = vld [vmem:[#allocation5 + $0xf0] sm:$0xff] }
  0x40   :  { %v1318_v40 = vpack.c.bf16 %v170_v38, %v169_v37  ;;  %v172_v42 = vld [vmem:[#allocation5 + $0xf8] sm:$0xff]  ;;  %v254_v44 = vld [vmem:[#allocation5 + $0x100] sm:$0xff]  ;;  %v255_v45 = vld [vmem:[#allocation5 + $0x108] sm:$0xff] }
  0x41   :  { %1301 = vmatpush3.bf16.msra.mxu1 %v1298_v17  ;;  %v1322_v43 = vpack.c.bf16 %v172_v42, %v171_v41  ;;  %v256_v46 = vld [vmem:[#allocation5 + $0x110] sm:$0xff]  ;;  %v1326_v47 = vpack.c.bf16 %v255_v45, %v254_v44  ;;  %v257_v48 = vld [vmem:[#allocation5 + $0x118] sm:$0xff]  ;;  %v258_v50 = vld [vmem:[#allocation5 + $0x120] sm:$0xff] }
  0x42   :  { %1281 = vmatpush3.bf16.msra.mxu0 %v1278_v10  ;;  %1303 = vmatprep.subr.bf16.mxu1 %v1302_v23  ;;  %v1330_v49 = vpack.c.bf16 %v257_v48, %v256_v46  ;;  %v259_v51 = vld [vmem:[#allocation5 + $0x128] sm:$0xff]  ;;  %v260_v53 = vld [vmem:[#allocation5 + $0x130] sm:$0xff]  ;;  %v261_v54 = vld [vmem:[#allocation5 + $0x138] sm:$0xff] }
  0x43   :  { %1283 = vmatprep.subr.bf16.mxu0 %v1282_v20  ;;  %v1334_v52 = vpack.c.bf16 %v259_v51, %v258_v50  ;;  %v1338_v55 = vpack.c.bf16 %v261_v54, %v260_v53  ;;  %v262_v56 = vld [vmem:[#allocation5 + $0x140] sm:$0xff]  ;;  %v263_v57 = vld [vmem:[#allocation5 + $0x148] sm:$0xff]  ;;  %v264_v59 = vld [vmem:[#allocation5 + $0x150] sm:$0xff] }
  0x44   :  { %v1342_v58 = vpack.c.bf16 %v263_v57, %v262_v56  ;;  %v265_v60 = vld [vmem:[#allocation5 + $0x158] sm:$0xff]  ;;  %v266_v62 = vld [vmem:[#allocation5 + $0x160] sm:$0xff]  ;;  %v267_v63 = vld [vmem:[#allocation5 + $0x168] sm:$0xff] }
  0x45   :  { %1305 = vmatpush3.bf16.msra.mxu1 %v1302_v23  ;;  %v1346_v61 = vpack.c.bf16 %v265_v60, %v264_v59  ;;  %v1350_v0 = vpack.c.bf16 %v267_v63, %v266_v62  ;;  %v1698_v4 = vld [vmem:[#allocation7] sm:$0xff]  ;;  %v268_v12 = vld [vmem:[#allocation5 + $0x170] sm:$0xff]  ;;  %v269_v13 = vld [vmem:[#allocation5 + $0x178] sm:$0xff] }
  0x46   :  { %1285 = vmatpush3.bf16.msra.mxu0 %v1282_v20  ;;  %1307 = vmatprep.subr.bf16.mxu1 %v1306_v29  ;;  %v72_v5 = vrot.slane %v1698_v4, %v71_v3  ;;  %v1354_v14 = vpack.c.bf16 %v269_v13, %v268_v12  ;;  %v351_v15 = vld [vmem:[#allocation5 + $0x180] sm:$0xff]  ;;  %v352_v16 = vld [vmem:[#allocation5 + $0x188] sm:$0xff]  ;;  %v353_v17 = vld [vmem:[#allocation5 + $0x190] sm:$0xff] }
  0x47   :  { %1287 = vmatprep.subr.bf16.mxu0 %v1286_v26  ;;  %v1358_v18 = vpack.c.bf16 %v352_v16, %v351_v15  ;;  %v354_v19 = vld [vmem:[#allocation5 + $0x198] sm:$0xff]  ;;  %v355_v21 = vld [vmem:[#allocation5 + $0x1a0] sm:$0xff]  ;;  %v356_v22 = vld [vmem:[#allocation5 + $0x1a8] sm:$0xff] }
  0x48   :  { %v1362_v20 = vpack.c.bf16 %v354_v19, %v353_v17  ;;  %v1366_v23 = vpack.c.bf16 %v356_v22, %v355_v21  ;;  %v357_v24 = vld [vmem:[#allocation5 + $0x1b0] sm:$0xff]  ;;  %v358_v25 = vld [vmem:[#allocation5 + $0x1b8] sm:$0xff]  ;;  %v359_v27 = vld [vmem:[#allocation5 + $0x1c0] sm:$0xff] }
  0x49   :  { %1309 = vmatpush3.bf16.msra.mxu1 %v1306_v29  ;;  %v360_v28 = vld [vmem:[#allocation5 + $0x1c8] sm:$0xff]  ;;  %v361_v30 = vld [vmem:[#allocation5 + $0x1d0] sm:$0xff]  ;;  %v362_v31 = vld [vmem:[#allocation5 + $0x1d8] sm:$0xff] }
  0x4a   :  { %1289 = vmatpush3.bf16.msra.mxu0 %v1286_v26  ;;  %1311 = vmatprep.subr.bf16.mxu1 %v1310_v33  ;;  %v1370_v26 = vpack.c.bf16 %v358_v25, %v357_v24  ;;  %v1374_v29 = vpack.c.bf16 %v360_v28, %v359_v27  ;;  %v364_v34 = vld [vmem:[#allocation5 + $0x1e8] sm:$0xff]  ;;  %v365_v44 = vld [vmem:[#allocation5 + $0x1f0] sm:$0xff]  ;;  %v366_v45 = vld [vmem:[#allocation5 + $0x1f8] sm:$0xff] }
  0x4b   :  { %1291 = vmatprep.subr.bf16.mxu0 %v1290_v32  ;;  %v1386_v46 = vpack.c.bf16 %v366_v45, %v365_v44  ;;  %v449_v48 = vld [vmem:[#allocation5 + $0x208] sm:$0xff]  ;;  %v451_v51 = vld [vmem:[#allocation5 + $0x218] sm:$0xff]  ;;  %v452_v53 = vld [vmem:[#allocation5 + $0x220] sm:$0xff] }
  0x4c   :  { %v453_v54 = vld [vmem:[#allocation5 + $0x228] sm:$0xff]  ;;  %v454_v56 = vld [vmem:[#allocation5 + $0x230] sm:$0xff]  ;;  %v455_v57 = vld [vmem:[#allocation5 + $0x238] sm:$0xff] }
  0x4d   :  { %1313 = vmatpush3.bf16.msra.mxu1 %v1310_v33  ;;  %v363_v33 = vld [vmem:[#allocation5 + $0x1e0] sm:$0xff]  ;;  %v457_v60 = vld [vmem:[#allocation5 + $0x248] sm:$0xff]  ;;  %v458_v62 = vld [vmem:[#allocation5 + $0x250] sm:$0xff] }
  0x4e   :  { %1293 = vmatpush3.bf16.msra.mxu0 %v1290_v32  ;;  %1315 = vmatprep.subr.bf16.mxu1 %v1314_v36  ;;  %v1378_v32 = vpack.c.bf16 %v362_v31, %v361_v30  ;;  %v1382_v35 = vpack.c.bf16 %v364_v34, %v363_v33  ;;  %v456_v59 = vld [vmem:[#allocation5 + $0x240] sm:$0xff]  ;;  %v459_v63 = vld [vmem:[#allocation5 + $0x258] sm:$0xff]  ;;  %v461_v3 = vld [vmem:[#allocation5 + $0x268] sm:$0xff] }
  0x4f   :  { %1327 = vmatprep.subr.bf16.mxu0 %v1326_v47  ;;  %v460_v1 = vld [vmem:[#allocation5 + $0x260] sm:$0xff]  ;;  %v463_v15 = vld [vmem:[#allocation5 + $0x278] sm:$0xff]  ;;  %v547_v19 = vld [vmem:[#allocation5 + $0x290] sm:$0xff] }
  0x50   :  { %v545_v17 = vld [vmem:[#allocation5 + $0x280] sm:$0xff]  ;;  %v548_v21 = vld [vmem:[#allocation5 + $0x298] sm:$0xff]  ;;  %v550_v24 = vld [vmem:[#allocation5 + $0x2a8] sm:$0xff] }
  0x51   :  { %1023 = vmatmul.mubr.msk.f32.vlgmr.msra.gmra.mrb[0].mxu0 %vm73_vm0, %v56_v39  ;;  %1317 = vmatpush3.bf16.msra.mxu1 %v1314_v36  ;;  %v175_v36 = vsub.s32 1, %v1695_v2  ;;  %v1426_v22 = vpack.c.bf16 %v548_v21, %v547_v19  ;;  %v552_v27 = vld [vmem:[#allocation5 + $0x2b8] sm:$0xff]  ;;  %v554_v30 = vld [vmem:[#allocation5 + $0x2c8] sm:$0xff]  ;;  %v739_v19 = vld [vmem:[#allocation5 + $0x380] sm:$0xff] }
  0x52   :  { %1319 = vmatprep.subr.bf16.mxu1 %v1318_v40  ;;  %1329 = vmatpush3.bf16.msra.mxu0 %v1326_v47  ;;  %v448_v47 = vld [vmem:[#allocation5 + $0x200] sm:$0xff]  ;;  %v556_v33 = vld [vmem:[#allocation5 + $0x2d8] sm:$0xff]  ;;  %v741_v21 = vld [vmem:[#allocation5 + $0x390] sm:$0xff] }
  0x53   :  { %1331 = vmatprep.subr.bf16.mxu0 %v1330_v49  ;;  %v176_v37 = vrot.slane %v1698_v4, %v175_v36  ;;  %v1390_v50 = vpack.c.bf16 %v449_v48, %v448_v47  ;;  %v558_v36 = vld [vmem:[#allocation5 + $0x2e8] sm:$0xff]  ;;  %v560_v47 = vld [vmem:[#allocation5 + $0x2f8] sm:$0xff] }
  0x55   :  { %1321 = vmatpush3.bf16.msra.mxu1 %v1318_v40 }
  0x56   :  { %1323 = vmatprep.subr.bf16.mxu1 %v1322_v43  ;;  %1333 = vmatpush3.bf16.msra.mxu0 %v1330_v49  ;;  %v450_v49 = vld [vmem:[#allocation5 + $0x210] sm:$0xff] }
  0x57   :  { %1335 = vmatprep.subr.bf16.mxu0 %v1334_v52 }
  0x59   :  { %1325 = vmatpush3.bf16.msra.mxu1 %v1322_v43 }
  0x5a   :  { %1337 = vmatpush3.bf16.msra.mxu0 %v1334_v52  ;;  %1359 = vmatprep.subr.bf16.mxu1 %v1358_v18  ;;  %v1394_v52 = vpack.c.bf16 %v451_v51, %v450_v49  ;;  %v642_v49 = vld [vmem:[#allocation5 + $0x300] sm:$0xff]  ;;  %v644_v51 = vld [vmem:[#allocation5 + $0x310] sm:$0xff] }
  0x5b   :  { %1339 = vmatprep.subr.bf16.mxu0 %v1338_v55 }
  0x5e   :  { %1341 = vmatpush3.bf16.msra.mxu0 %v1338_v55  ;;  %v1398_v55 = vpack.c.bf16 %v453_v54, %v452_v53  ;;  %v645_v53 = vld [vmem:[#allocation5 + $0x318] sm:$0xff] }
  0x5f   :  { %1343 = vmatprep.subr.bf16.mxu0 %v1342_v58  ;;  %v1458_v54 = vpack.c.bf16 %v645_v53, %v644_v51  ;;  %v660_v51 = vsub.s32 6, %v1695_v2 }
  0x62   :  { %1345 = vmatpush3.bf16.msra.mxu0 %v1342_v58  ;;  %v1402_v58 = vpack.c.bf16 %v455_v57, %v454_v56  ;;  %v647_v56 = vld [vmem:[#allocation5 + $0x328] sm:$0xff] }
  0x63   :  { %1347 = vmatprep.subr.bf16.mxu0 %v1346_v61 }
  0x66   :  { %1349 = vmatpush3.bf16.msra.mxu0 %v1346_v61  ;;  %v1406_v61 = vpack.c.bf16 %v457_v60, %v456_v59  ;;  %v649_v59 = vld [vmem:[#allocation5 + $0x338] sm:$0xff] }
  0x67   :  { %1351 = vmatprep.subr.bf16.mxu0 %v1350_v0 }
  0x6a   :  { %1353 = vmatpush3.bf16.msra.mxu0 %v1350_v0  ;;  %v1410_v0 = vpack.c.bf16 %v459_v63, %v458_v62  ;;  %v651_v62 = vld [vmem:[#allocation5 + $0x348] sm:$0xff] }
  0x6b   :  { %1355 = vmatprep.subr.bf16.mxu0 %v1354_v14 }
  0x6e   :  { %1357 = vmatpush3.bf16.msra.mxu0 %v1354_v14  ;;  %v462_v14 = vld [vmem:[#allocation5 + $0x270] sm:$0xff] }
  0x6f   :  { %1391 = vmatprep.subr.bf16.mxu0 %v1390_v50  ;;  %v1418_v16 = vpack.c.bf16 %v463_v15, %v462_v14 }
 0x124   :  { %v1024_v6 = vpop.f32.mrb[0].mxu0 }
 0x125   :  { %v152_v7 = vadd.f32 %v1024_v6, %v72_v5  ;;  %v146_v8 = vpop.f32.mrb[1].mxu0  ;;  %v272_v6 = vsub.s32 2, %v1695_v2 }
 0x126   :  { %v147_v9 = vadd.f32 %v146_v8, %v72_v5  ;;  %v1414_v5 = vpack.c.bf16 %v461_v3, %v460_v1  ;;  %v653_v1 = vld [vmem:[#allocation5 + $0x358] sm:$0xff] }
 0x127   :  { %v156_v11 = vmax.f32 %v152_v7, 0.0  ;;  %v273_v7 = vrot.slane %v1698_v4, %v272_v6  ;;  %v655_v6 = vld [vmem:[#allocation5 + $0x368] sm:$0xff] }
 0x128   :  { %v155_v10 = vmax.f32 %v147_v9, 0.0 }
 0x12a   :  { %1057 = vmatprep.mubr.f32.mxu1 %v155_v10 }
 0x12b   :  { %1058 = vmatmul.mubr.f32.vlgmr.msra.gmra.mrb[0].mxu1 %v156_v11 }
 0x12c   :  { %1361 = vmatpush3.bf16.msra.mxu1 %v1358_v18  ;;  %v546_v18 = vld [vmem:[#allocation5 + $0x288] sm:$0xff] }
 0x12d   :  { %1363 = vmatprep.subr.bf16.mxu1 %v1362_v20 }
 0x130   :  { %1365 = vmatpush3.bf16.msra.mxu1 %v1362_v20  ;;  %v1422_v20 = vpack.c.bf16 %v546_v18, %v545_v17  ;;  %v657_v17 = vld [vmem:[#allocation5 + $0x378] sm:$0xff] }
 0x131   :  { %1367 = vmatprep.subr.bf16.mxu1 %v1366_v23 }
 0x134   :  { %1369 = vmatpush3.bf16.msra.mxu1 %v1366_v23  ;;  %v549_v23 = vld [vmem:[#allocation5 + $0x2a0] sm:$0xff] }
 0x135   :  { %1371 = vmatprep.subr.bf16.mxu1 %v1370_v26  ;;  %v1430_v25 = vpack.c.bf16 %v550_v24, %v549_v23  ;;  %v742_v23 = vld [vmem:[#allocation5 + $0x398] sm:$0xff] }
 0x136   :  { %v1490_v24 = vpack.c.bf16 %v742_v23, %v741_v21 }
 0x138   :  { %1373 = vmatpush3.bf16.msra.mxu1 %v1370_v26  ;;  %v551_v26 = vld [vmem:[#allocation5 + $0x2b0] sm:$0xff] }
 0x139   :  { %1375 = vmatprep.subr.bf16.mxu1 %v1374_v29  ;;  %v1434_v28 = vpack.c.bf16 %v552_v27, %v551_v26  ;;  %v744_v26 = vld [vmem:[#allocation5 + $0x3a8] sm:$0xff] }
 0x13c   :  { %1377 = vmatpush3.bf16.msra.mxu1 %v1374_v29  ;;  %v553_v29 = vld [vmem:[#allocation5 + $0x2c0] sm:$0xff] }
 0x13d   :  { %1379 = vmatprep.subr.bf16.mxu1 %v1378_v32  ;;  %v1438_v31 = vpack.c.bf16 %v554_v30, %v553_v29  ;;  %v746_v29 = vld [vmem:[#allocation5 + $0x3b8] sm:$0xff] }
 0x140   :  { %1381 = vmatpush3.bf16.msra.mxu1 %v1378_v32  ;;  %v555_v32 = vld [vmem:[#allocation5 + $0x2d0] sm:$0xff] }
 0x141   :  { %1383 = vmatprep.subr.bf16.mxu1 %v1382_v35  ;;  %v1442_v34 = vpack.c.bf16 %v556_v33, %v555_v32  ;;  %v748_v32 = vld [vmem:[#allocation5 + $0x3c8] sm:$0xff] }
 0x144   :  { %1385 = vmatpush3.bf16.msra.mxu1 %v1382_v35  ;;  %v557_v35 = vld [vmem:[#allocation5 + $0x2e0] sm:$0xff] }
 0x145   :  { %1387 = vmatprep.subr.bf16.mxu1 %v1386_v46 }
 0x148   :  { %1389 = vmatpush3.bf16.msra.mxu1 %v1386_v46  ;;  %v559_v46 = vld [vmem:[#allocation5 + $0x2f0] sm:$0xff] }
 0x149   :  { %1423 = vmatprep.subr.bf16.mxu1 %v1422_v20  ;;  %v1450_v48 = vpack.c.bf16 %v560_v47, %v559_v46 }
 0x1fe   :  { %v1059_v38 = vpop.f32.mrb[0].mxu1 }
 0x1ff   :  { %v249_v39 = vadd.f32 %v1059_v38, %v176_v37  ;;  %v243_v40 = vpop.f32.mrb[1].mxu1  ;;  %v369_v38 = vsub.s32 3, %v1695_v2 }
 0x200   :  { %v244_v41 = vadd.f32 %v243_v40, %v176_v37  ;;  %v1446_v37 = vpack.c.bf16 %v558_v36, %v557_v35  ;;  %v750_v35 = vld [vmem:[#allocation5 + $0x3d8] sm:$0xff] }
 0x201   :  { %v253_v43 = vmax.f32 %v249_v39, 0.0  ;;  %v370_v39 = vrot.slane %v1698_v4, %v369_v38  ;;  %v752_v38 = vld [vmem:[#allocation5 + $0x3e8] sm:$0xff] }
 0x202   :  { %v252_v42 = vmax.f32 %v244_v41, 0.0 }
 0x204   :  { %1092 = vmatprep.mubr.f32.mxu0 %v252_v42 }
 0x205   :  { %1093 = vmatmul.mubr.f32.vlgmr.msra.gmra.mrb[2].mxu0 %v253_v43 }
 0x206   :  { %1393 = vmatpush3.bf16.msra.mxu0 %v1390_v50  ;;  %v643_v50 = vld [vmem:[#allocation5 + $0x308] sm:$0xff] }
 0x207   :  { %1395 = vmatprep.subr.bf16.mxu0 %v1394_v52 }
 0x20a   :  { %1397 = vmatpush3.bf16.msra.mxu0 %v1394_v52  ;;  %v1454_v52 = vpack.c.bf16 %v643_v50, %v642_v49  ;;  %v754_v49 = vld [vmem:[#allocation5 + $0x3f8] sm:$0xff] }
 0x20b   :  { %1399 = vmatprep.subr.bf16.mxu0 %v1398_v55 }
 0x20e   :  { %1401 = vmatpush3.bf16.msra.mxu0 %v1398_v55  ;;  %v646_v55 = vld [vmem:[#allocation5 + $0x320] sm:$0xff] }
 0x20f   :  { %1403 = vmatprep.subr.bf16.mxu0 %v1402_v58  ;;  %v1462_v57 = vpack.c.bf16 %v647_v56, %v646_v55 }
 0x212   :  { %1405 = vmatpush3.bf16.msra.mxu0 %v1402_v58  ;;  %v648_v58 = vld [vmem:[#allocation5 + $0x330] sm:$0xff] }
 0x213   :  { %1407 = vmatprep.subr.bf16.mxu0 %v1406_v61  ;;  %v1466_v60 = vpack.c.bf16 %v649_v59, %v648_v58  ;;  %v757_v59 = vsub.s32 7, %v1695_v2 }
 0x216   :  { %1409 = vmatpush3.bf16.msra.mxu0 %v1406_v61  ;;  %v650_v61 = vld [vmem:[#allocation5 + $0x340] sm:$0xff] }
 0x217   :  { %1411 = vmatprep.subr.bf16.mxu0 %v1410_v0  ;;  %v1470_v63 = vpack.c.bf16 %v651_v62, %v650_v61 }
 0x21a   :  { %1413 = vmatpush3.bf16.msra.mxu0 %v1410_v0  ;;  %v652_v0 = vld [vmem:[#allocation5 + $0x350] sm:$0xff] }
 0x21b   :  { %1415 = vmatprep.subr.bf16.mxu0 %v1414_v5  ;;  %v1474_v3 = vpack.c.bf16 %v653_v1, %v652_v0 }
 0x21e   :  { %1417 = vmatpush3.bf16.msra.mxu0 %v1414_v5  ;;  %v654_v5 = vld [vmem:[#allocation5 + $0x360] sm:$0xff] }
 0x21f   :  { %1419 = vmatprep.subr.bf16.mxu0 %v1418_v16 }
 0x222   :  { %1421 = vmatpush3.bf16.msra.mxu0 %v1418_v16  ;;  %v656_v16 = vld [vmem:[#allocation5 + $0x370] sm:$0xff] }
 0x223   :  { %1455 = vmatprep.subr.bf16.mxu0 %v1454_v52  ;;  %v1482_v18 = vpack.c.bf16 %v657_v17, %v656_v16 }
 0x2d8   :  { %v1094_v8 = vpop.f32.mrb[2].mxu0 }
 0x2d9   :  { %v346_v9 = vadd.f32 %v1094_v8, %v273_v7  ;;  %v340_v10 = vpop.f32.mrb[3].mxu0  ;;  %v466_v8 = vsub.s32 4, %v1695_v2 }
 0x2da   :  { %v341_v11 = vadd.f32 %v340_v10, %v273_v7  ;;  %v1478_v7 = vpack.c.bf16 %v655_v6, %v654_v5 }
 0x2db   :  { %v350_v13 = vmax.f32 %v346_v9, 0.0  ;;  %v467_v9 = vrot.slane %v1698_v4, %v466_v8 }
 0x2dc   :  { %v349_v12 = vmax.f32 %v341_v11, 0.0 }
 0x2de   :  { %1127 = vmatprep.mubr.f32.mxu1 %v349_v12 }
 0x2df   :  { %1128 = vmatmul.mubr.f32.vlgmr.msra.gmra.mrb[2].mxu1 %v350_v13 }
 0x2e0   :  { %1425 = vmatpush3.bf16.msra.mxu1 %v1422_v20  ;;  %v740_v20 = vld [vmem:[#allocation5 + $0x388] sm:$0xff] }
 0x2e1   :  { %1427 = vmatprep.subr.bf16.mxu1 %v1426_v22 }
 0x2e4   :  { %1429 = vmatpush3.bf16.msra.mxu1 %v1426_v22  ;;  %v1486_v22 = vpack.c.bf16 %v740_v20, %v739_v19 }
 0x2e5   :  { %1431 = vmatprep.subr.bf16.mxu1 %v1430_v25 }
 0x2e8   :  { %1433 = vmatpush3.bf16.msra.mxu1 %v1430_v25  ;;  %v743_v25 = vld [vmem:[#allocation5 + $0x3a0] sm:$0xff] }
 0x2e9   :  { %1435 = vmatprep.subr.bf16.mxu1 %v1434_v28  ;;  %v1494_v27 = vpack.c.bf16 %v744_v26, %v743_v25 }
 0x2ec   :  { %1437 = vmatpush3.bf16.msra.mxu1 %v1434_v28  ;;  %v745_v28 = vld [vmem:[#allocation5 + $0x3b0] sm:$0xff] }
 0x2ed   :  { %1439 = vmatprep.subr.bf16.mxu1 %v1438_v31  ;;  %v1498_v30 = vpack.c.bf16 %v746_v29, %v745_v28 }
 0x2f0   :  { %1441 = vmatpush3.bf16.msra.mxu1 %v1438_v31  ;;  %v747_v31 = vld [vmem:[#allocation5 + $0x3c0] sm:$0xff] }
 0x2f1   :  { %1443 = vmatprep.subr.bf16.mxu1 %v1442_v34  ;;  %v1502_v33 = vpack.c.bf16 %v748_v32, %v747_v31 }
 0x2f4   :  { %1445 = vmatpush3.bf16.msra.mxu1 %v1442_v34  ;;  %v749_v34 = vld [vmem:[#allocation5 + $0x3d0] sm:$0xff] }
 0x2f5   :  { %1447 = vmatprep.subr.bf16.mxu1 %v1446_v37  ;;  %v1506_v36 = vpack.c.bf16 %v750_v35, %v749_v34 }
 0x2f8   :  { %1449 = vmatpush3.bf16.msra.mxu1 %v1446_v37  ;;  %v751_v37 = vld [vmem:[#allocation5 + $0x3e0] sm:$0xff] }
 0x2f9   :  { %1451 = vmatprep.subr.bf16.mxu1 %v1450_v48 }
 0x2fc   :  { %1453 = vmatpush3.bf16.msra.mxu1 %v1450_v48  ;;  %v753_v48 = vld [vmem:[#allocation5 + $0x3f0] sm:$0xff] }
 0x2fd   :  { %1487 = vmatprep.subr.bf16.mxu1 %v1486_v22  ;;  %v1514_v50 = vpack.c.bf16 %v754_v49, %v753_v48 }
 0x3b2   :  { %v1129_v40 = vpop.f32.mrb[2].mxu1 }
 0x3b3   :  { %v443_v41 = vadd.f32 %v1129_v40, %v370_v39  ;;  %v437_v42 = vpop.f32.mrb[3].mxu1  ;;  %v563_v40 = vsub.s32 5, %v1695_v2 }
 0x3b4   :  { %v438_v43 = vadd.f32 %v437_v42, %v370_v39  ;;  %v1510_v39 = vpack.c.bf16 %v752_v38, %v751_v37 }
 0x3b5   :  { %v447_v45 = vmax.f32 %v443_v41, 0.0  ;;  %v564_v41 = vrot.slane %v1698_v4, %v563_v40 }
 0x3b6   :  { %v446_v44 = vmax.f32 %v438_v43, 0.0 }
 0x3b8   :  { %1162 = vmatprep.mubr.f32.mxu0 %v446_v44 }
 0x3b9   :  { %1163 = vmatmul.mubr.f32.vlgmr.msra.gmra.mrb[4].mxu0 %v447_v45 }
 0x3ba   :  { %1457 = vmatpush3.bf16.msra.mxu0 %v1454_v52  ;;  %v661_v52 = vrot.slane %v1698_v4, %v660_v51 }
 0x3bb   :  { %1459 = vmatprep.subr.bf16.mxu0 %v1458_v54 }
 0x3be   :  { %1461 = vmatpush3.bf16.msra.mxu0 %v1458_v54 }
 0x3bf   :  { %1463 = vmatprep.subr.bf16.mxu0 %v1462_v57 }
 0x3c2   :  { %1465 = vmatpush3.bf16.msra.mxu0 %v1462_v57 }
 0x3c3   :  { %1467 = vmatprep.subr.bf16.mxu0 %v1466_v60 }
 0x3c6   :  { %1469 = vmatpush3.bf16.msra.mxu0 %v1466_v60  ;;  %v758_v60 = vrot.slane %v1698_v4, %v757_v59 }
 0x3c7   :  { %1471 = vmatprep.subr.bf16.mxu0 %v1470_v63 }
 0x3ca   :  { %1473 = vmatpush3.bf16.msra.mxu0 %v1470_v63 }
 0x3cb   :  { %1475 = vmatprep.subr.bf16.mxu0 %v1474_v3 }
 0x3ce   :  { %1477 = vmatpush3.bf16.msra.mxu0 %v1474_v3 }
 0x3cf   :  { %1479 = vmatprep.subr.bf16.mxu0 %v1478_v7 }
 0x3d2   :  { %1481 = vmatpush3.bf16.msra.mxu0 %v1478_v7 }
 0x3d3   :  { %1483 = vmatprep.subr.bf16.mxu0 %v1482_v18 }
 0x3d6   :  { %1485 = vmatpush3.bf16.msra.mxu0 %v1482_v18 }
 0x48c   :  { %v1164_v10 = vpop.f32.mrb[4].mxu0 }
 0x48d   :  { %v540_v11 = vadd.f32 %v1164_v10, %v467_v9  ;;  %v534_v12 = vpop.f32.mrb[5].mxu0 }
 0x48e   :  { %v535_v13 = vadd.f32 %v534_v12, %v467_v9 }
 0x48f   :  { %v544_v15 = vmax.f32 %v540_v11, 0.0 }
 0x490   :  { %v543_v14 = vmax.f32 %v535_v13, 0.0 }
 0x492   :  { %1197 = vmatprep.mubr.f32.mxu1 %v543_v14 }
 0x493   :  { %1198 = vmatmul.mubr.f32.vlgmr.msra.gmra.mrb[4].mxu1 %v544_v15 }
 0x494   :  { %1489 = vmatpush3.bf16.msra.mxu1 %v1486_v22 }
 0x495   :  { %1491 = vmatprep.subr.bf16.mxu1 %v1490_v24 }
 0x498   :  { %1493 = vmatpush3.bf16.msra.mxu1 %v1490_v24 }
 0x499   :  { %1495 = vmatprep.subr.bf16.mxu1 %v1494_v27 }
 0x49c   :  { %1497 = vmatpush3.bf16.msra.mxu1 %v1494_v27 }
 0x49d   :  { %1499 = vmatprep.subr.bf16.mxu1 %v1498_v30 }
 0x4a0   :  { %1501 = vmatpush3.bf16.msra.mxu1 %v1498_v30 }
 0x4a1   :  { %1503 = vmatprep.subr.bf16.mxu1 %v1502_v33 }
 0x4a4   :  { %1505 = vmatpush3.bf16.msra.mxu1 %v1502_v33 }
 0x4a5   :  { %1507 = vmatprep.subr.bf16.mxu1 %v1506_v36 }
 0x4a8   :  { %1509 = vmatpush3.bf16.msra.mxu1 %v1506_v36 }
 0x4a9   :  { %1511 = vmatprep.subr.bf16.mxu1 %v1510_v39 }
 0x4ac   :  { %1513 = vmatpush3.bf16.msra.mxu1 %v1510_v39 }
 0x4ad   :  { %1515 = vmatprep.subr.bf16.mxu1 %v1514_v50 }
 0x4b0   :  { %1517 = vmatpush3.bf16.msra.mxu1 %v1514_v50 }
 0x566   :  { %v1199_v42 = vpop.f32.mrb[4].mxu1 }
 0x567   :  { %v637_v43 = vadd.f32 %v1199_v42, %v564_v41  ;;  %v631_v44 = vpop.f32.mrb[5].mxu1 }
 0x568   :  { %v632_v45 = vadd.f32 %v631_v44, %v564_v41 }
 0x569   :  { %v641_v47 = vmax.f32 %v637_v43, 0.0 }
 0x56a   :  { %v640_v46 = vmax.f32 %v632_v45, 0.0 }
 0x56c   :  { %1232 = vmatprep.mubr.f32.mxu0 %v640_v46 }
 0x56d   :  { %1233 = vmatmul.mubr.f32.vlgmr.msra.gmra.mrb[6].mxu0 %v641_v47 }
 0x640   :  { %v1234_v53 = vpop.f32.mrb[6].mxu0 }
 0x641   :  { %v734_v54 = vadd.f32 %v1234_v53, %v661_v52  ;;  %v728_v55 = vpop.f32.mrb[7].mxu0 }
 0x642   :  { %v729_v56 = vadd.f32 %v728_v55, %v661_v52 }
 0x643   :  { %v738_v58 = vmax.f32 %v734_v54, 0.0 }
 0x644   :  { %v737_v57 = vmax.f32 %v729_v56, 0.0 }
 0x646   :  { %1267 = vmatprep.mubr.f32.mxu1 %v737_v57 }
 0x647   :  { %1268 = vmatmul.mubr.f32.vlgmr.msra.gmra.mrb[6].mxu1 %v738_v58 }
 0x71a   :  { %v1269_v61 = vpop.f32.mrb[6].mxu1 }
 0x71b   :  { %v831_v62 = vadd.f32 %v1269_v61, %v758_v60  ;;  %v825_v63 = vpop.f32.mrb[7].mxu1 }
 0x71c   :  { %v826_v0 = vadd.f32 %v825_v63, %v758_v60 }
 0x71d   :  { %v835_v1 = vmax.f32 %v831_v62, 0.0 }
 0x71e   :  { %v834_v3 = vmax.f32 %v826_v0, 0.0 }
 0x71f   :  { %837 = vst [vmem:[#allocation8 + $0x8] sm:$0xff] %v835_v1 }
 0x720   :  { %836 = vst [vmem:[#allocation8] sm:$0xff] %v834_v3 }
 0x721   :  { %1601 = shalt.err (!%p1598_p0)
}
 0x722   :  { %s1602_s27 = scalar_lea.hbm %s1733_s3, 256 }
 0x723   :  { %p1603_p1 = scmp.ne.s32.totalorder %s1733_s3, %s1602_s27  ;;  %p1606_p2 = scmp.lt.u32.totalorder %s1602_s27, %s1733_s3 }
 0x725   :  { %p1608_p3 = pnand %p1606_p2, %p1603_p1 }
 0x727   :  { %1611 = shalt.err (!%p1608_p3)
}
 0x728   :  { %849 = dma.vmem_to_hbm [thread:$0]  %s844_s21, 256, %s1733_s3, [#allocation4], %s1620_s24, %s1620_s24, %s1621_s25  }
 0x729   :  { %1616 = dma.done.wait [#allocation4], 256  }
 0x72a   :  { %1617 = vsyncadd [#allocation4], 4294967040 }
 0x72b   :  { %853 = vsyncpa [#allocation3], 1 }
 0x72c   :  { %854 = vsyncpa [#allocation6], 1 }
 0x72d   :  { %855 = vsyncpa [#allocation4], 1 }

</bundles_post_ra>
